<compile_context>
chip_gen: v5e
topology: v5e:2x2
jax: 0.10.0
libtpu: 0.0.40
codegen_flags: <defaults>
</compile_context>

<pallas_src>
import jax
import jax.numpy as jnp
from jax.experimental import pallas as pl
from jax.experimental.pallas import tpu as pltpu


def _round_up(x, m):
    return (x + m - 1) // m * m


def _cdiv(a, b):
    return (a + b - 1) // b


# ----------------------------- kernels --------------------------------------


def ffn_kernel_fused(x_ref, w1_ref, b1_ref, w2_ref, b2_ref, o_ref):
    """Single hidden tile (weights VMEM-resident): no scratch accumulator."""
    h = jnp.dot(x_ref[...], w1_ref[...], preferred_element_type=jnp.float32)
    h = jnp.maximum(h + b1_ref[...], 0.0)            # nn.ReLU(), f32 on the VPU
    h = h.astype(w2_ref.dtype)                        # bf16 weights stay bf16 -> MXU
    y = jnp.dot(h, w2_ref[...], preferred_element_type=jnp.float32) + b2_ref[...]
    o_ref[...] = y.astype(o_ref.dtype)


def ffn_kernel_acc(x_ref, w1_ref, b1_ref, w2_ref, b2_ref, o_ref, acc_ref):
    """Hidden dim streamed in tk tiles; f32 accumulator in VMEM scratch."""
    k = pl.program_id(1)

    @pl.when(k == 0)
    def _init():
        # Start at the broadcast output bias so the epilogue is just cast+store.
        acc_ref[...] = jnp.broadcast_to(
            b2_ref[...].astype(jnp.float32), acc_ref.shape)

    h = jnp.dot(x_ref[...], w1_ref[...], preferred_element_type=jnp.float32)
    h = jnp.maximum(h + b1_ref[...], 0.0)
    h = h.astype(w2_ref.dtype)
    acc_ref[...] += jnp.dot(h, w2_ref[...], preferred_element_type=jnp.float32)

    @pl.when(k == pl.num_programs(1) - 1)
    def _finalize():
        o_ref[...] = acc_ref[...].astype(o_ref.dtype)


# ----------------------------- planning -------------------------------------


def _vmem_capacity_bytes():
    try:
        cap = getattr(pltpu.get_tpu_info(), "vmem_capacity_bytes", None)
        if cap:
            return int(cap)
    except Exception:
        pass
    # Conservative fallback: smallest per-core VMEM of supported generations.
    return 64 * 2 ** 20


def _plan(M, d_in, d_h, d_out, x_item, w_item, tm_req, tk_req):
    """Pick (tm, tk, n_k, d_h_pad, vmem_limit) from the chip's VMEM budget."""
    vmem_cap = _vmem_capacity_bytes()
    budget = int(vmem_cap * 0.70)                 # headroom for compiler scratch

    row_align = max(8, 32 // max(1, x_item))      # full sublane packing per dtype
    m_rows = _round_up(max(M, 1), row_align)

    def tile_bytes(tm, tk, with_acc):
        b = 2 * tm * d_in * x_item                # x tile (double-buffered)
        b += 2 * tm * d_out * x_item              # out tile
        b += 2 * d_in * tk * w_item + 2 * tk * w_item        # W1 + b1 tiles
        b += 2 * tk * d_out * w_item + 2 * d_out * w_item    # W2 + b2 tiles
        if with_acc:
            b += 4 * tm * d_out                   # f32 scratch accumulator
        return b

    # ---- row tile ----
    if tm_req is not None:
        tm = min(_round_up(max(tm_req, row_align), row_align),
                 _round_up(m_rows, row_align))
    else:
        tm = _round_up(min(1024, _round_up(m_rows, row_align)), row_align)
        # Megacore (v7x): keep >= 2 row tiles when there is enough work so the
        # "parallel" axis can be sharded across both TensorCores.
        if m_rows >= 512 and tm >= m_rows:
            tm = _round_up(_cdiv(m_rows, 2), row_align)
        # Re-balance so the last row tile isn't mostly padding.
        n_m = _cdiv(m_rows, tm)
        tm = _round_up(_cdiv(m_rows, n_m), row_align)

    # ---- hidden tile ----
    if tk_req is not None:
        tk = int(tk_req)
        assert tk == d_h or tk % 128 == 0, "tk must equal d_h or be a multiple of 128"
    else:
        tk = None
        # Prefer fully VMEM-resident weights: fetched once, reused per row tile.
        cands = []
        for t in (tm, 512, 256):
            t = _round_up(max(min(t, tm), row_align), row_align)
            if t not in cands:
                cands.append(t)
        cands.sort(reverse=True)
        for t in cands:
            if tile_bytes(t, d_h, with_acc=False) <= budget:
                tm, tk = t, d_h
                break
        if tk is None:
            # Stream the hidden dim: keep tm large (AI of streamed weights ~ tm
            # flops/byte), spend leftover VMEM on the hidden tile.
            while tm > row_align and tile_bytes(tm, 128, with_acc=True) > budget:
                tm = _round_up(max(row_align, tm // 2), row_align)
            rem = budget - tile_bytes(tm, 0, with_acc=True)
            tk_cap = max(128, (rem // (2 * (d_in + d_out) * w_item)) // 128 * 128)
            d_h128 = _round_up(d_h, 128)
            n_k = _cdiv(d_h128, tk_cap)
            tk = _round_up(_cdiv(d_h128, n_k), 128)

    d_h_pad = d_h if tk == d_h else _round_up(d_h, tk)
    n_k = max(1, d_h_pad // tk)

    est = tile_bytes(tm, d_h_pad if n_k == 1 else tk, with_acc=(n_k > 1))
    vmem_limit = min(int(vmem_cap * 0.85), max(32 * 2 ** 20, int(est * 1.5)))
    vmem_limit = max(vmem_limit, min(est + (2 << 20), vmem_cap))

    return tm, tk, n_k, d_h_pad, int(vmem_limit)


# ----------------------------- wrapper ---------------------------------------


def position_wise_ffn(x, w1, b1, w2, b2, *, tm=None, tk=None):
    """x: (..., dim_input) -> (..., dim_output); relu(x@W1+b1)@W2+b2 in Pallas."""
    orig_shape = x.shape
    d_in, d_h = w1.shape
    d_out = w2.shape[1]
    b1 = b1.reshape(1, d_h)
    b2 = b2.reshape(1, d_out)

    x2d = x.reshape(-1, d_in)
    M = x2d.shape[0]

    x_item = jnp.dtype(x.dtype).itemsize
    w_item = jnp.dtype(w1.dtype).itemsize

    tm, tk, n_k, d_h_pad, vmem_limit = _plan(
        M, d_in, d_h, d_out, x_item, w_item, tm, tk)

    # Zero-pad rows to a multiple of tm (garbage rows are sliced off below).
    m_pad = _round_up(M, tm)
    if m_pad != M:
        x2d = jnp.pad(x2d, ((0, m_pad - M), (0, 0)))
    # Zero-pad the hidden dim so tk always divides it. Padded hidden units are
    # relu(0 + 0) = 0 and multiply zero W2 rows, so the result is unchanged.
    if d_h_pad != d_h:
        w1 = jnp.pad(w1, ((0, 0), (0, d_h_pad - d_h)))
        b1 = jnp.pad(b1, ((0, 0), (0, d_h_pad - d_h)))
        w2 = jnp.pad(w2, ((0, d_h_pad - d_h), (0, 0)))

    if n_k == 1:
        # Weights VMEM-resident: constant weight index_maps -> fetched once.
        grid = (m_pad // tm,)
        kernel = ffn_kernel_fused
        in_specs = [
            pl.BlockSpec((tm, d_in), lambda i: (i, 0)),
            pl.BlockSpec((d_in, d_h_pad), lambda i: (0, 0)),
            pl.BlockSpec((1, d_h_pad), lambda i: (0, 0)),
            pl.BlockSpec((d_h_pad, d_out), lambda i: (0, 0)),
            pl.BlockSpec((1, d_out), lambda i: (0, 0)),
        ]
        out_specs = pl.BlockSpec((tm, d_out), lambda i: (i, 0))
        scratch_shapes = []
        dims = ("parallel",)
    else:
        # Hidden dim streamed (reduction axis last); f32 accumulator scratch.
        grid = (m_pad // tm, n_k)
        kernel = ffn_kernel_acc
        in_specs = [
            pl.BlockSpec((tm, d_in), lambda i, k: (i, 0)),
            pl.BlockSpec((d_in, tk), lambda i, k: (0, k)),
            pl.BlockSpec((1, tk), lambda i, k: (0, k)),
            pl.BlockSpec((tk, d_out), lambda i, k: (k, 0)),
            pl.BlockSpec((1, d_out), lambda i, k: (0, 0)),
        ]
        out_specs = pl.BlockSpec((tm, d_out), lambda i, k: (i, 0))
        scratch_shapes = [pltpu.VMEM((tm, d_out), jnp.float32)]
        dims = ("parallel", "arbitrary")

    out = pl.pallas_call(
        kernel,
        out_shape=jax.ShapeDtypeStruct((m_pad, d_out), x.dtype),
        grid_spec=pltpu.PrefetchScalarGridSpec(
            num_scalar_prefetch=0,
            grid=grid,
            in_specs=in_specs,
            out_specs=out_specs,
            scratch_shapes=scratch_shapes,
        ),
        compiler_params=pltpu.CompilerParams(
            dimension_semantics=dims,
            vmem_limit_bytes=vmem_limit,
        ),
    )(x2d, w1, b1, w2, b2)

    out = out[:M]
    return out.reshape(*orig_shape[:-1], d_out)


def _reference(x, w1, b1, w2, b2):
    return jnp.maximum(x @ w1 + b1[0], 0.0) @ w2 + b2[0]


if __name__ == "__main__":
    key = jax.random.PRNGKey(0)

    # --- Check 1: module-implied shapes, auto plan (weights VMEM-resident) ---
    batch, seq = 2, 8
    dim_input, dim_hidden, dim_output = 32, 64, 32
    k_x, k_w1, k_b1, k_w2, k_b2, key = jax.random.split(key, 6)
    x = jax.random.normal(k_x, (batch, seq, dim_input), dtype=jnp.float32)
    w1 = jax.random.normal(k_w1, (dim_input, dim_hidden), dtype=jnp.float32) * 0.1
    b1 = jax.random.normal(k_b1, (1, dim_hidden), dtype=jnp.float32) * 0.1
    w2 = jax.random.normal(k_w2, (dim_hidden, dim_output), dtype=jnp.float32) * 0.1
    b2 = jax.random.normal(k_b2, (1, dim_output), dtype=jnp.float32) * 0.1

    y = position_wise_ffn(x, w1, b1, w2, b2)
    jax.block_until_ready(y)
    y_ref = _reference(x, w1, b1, w2, b2)
    assert y.shape == (batch, seq, dim_output)
    assert jnp.allclose(y, y_ref, atol=1e-4, rtol=1e-4)

    # --- Check 2: row padding + streamed hidden dim (multi-k accumulator) ---
    batch2, seq2 = 3, 8                    # M=24 rows, padded to 32 with tm=16
    d_in2, d_h2, d_out2 = 128, 256, 128
    k_x, k_w1, k_b1, k_w2, k_b2, key = jax.random.split(key, 6)
    x2 = jax.random.normal(k_x, (batch2, seq2, d_in2), dtype=jnp.float32)
    w1b = jax.random.normal(k_w1, (d_in2, d_h2), dtype=jnp.float32) * 0.05
    b1b = jax.random.normal(k_b1, (1, d_h2), dtype=jnp.float32) * 0.05
    w2b = jax.random.normal(k_w2, (d_h2, d_out2), dtype=jnp.float32) * 0.05
    b2b = jax.random.normal(k_b2, (1, d_out2), dtype=jnp.float32) * 0.05

    y2 = position_wise_ffn(x2, w1b, b1b, w2b, b2b, tm=16, tk=128)
    jax.block_until_ready(y2)
    y2_ref = _reference(x2, w1b, b1b, w2b, b2b)
    assert y2.shape == (batch2, seq2, d_out2)
    assert jnp.allclose(y2, y2_ref, atol=1e-4, rtol=1e-4)

    # --- Check 3: hidden dim not a multiple of tk (zero-pad path) ---
    d_in3, d_h3, d_out3 = 128, 192, 128    # tk=128 -> d_h padded to 256
    k_x, k_w1, k_b1, k_w2, k_b2, key = jax.random.split(key, 6)
    x3 = jax.random.normal(k_x, (2, 8, d_in3), dtype=jnp.float32)
    w1c = jax.random.normal(k_w1, (d_in3, d_h3), dtype=jnp.float32) * 0.05
    b1c = jax.random.normal(k_b1, (1, d_h3), dtype=jnp.float32) * 0.05
    w2c = jax.random.normal(k_w2, (d_h3, d_out3), dtype=jnp.float32) * 0.05
    b2c = jax.random.normal(k_b2, (1, d_out3), dtype=jnp.float32) * 0.05

    y3 = position_wise_ffn(x3, w1c, b1c, w2c, b2c, tk=128)
    jax.block_until_ready(y3)
    y3_ref = _reference(x3, w1c, b1c, w2c, b2c)
    assert jnp.allclose(y3, y3_ref, atol=1e-4, rtol=1e-4)

    print("KERNEL_OK")
</pallas_src>

<mosaic_0001>
module attributes {stable_mosaic.version = 11 : i64} {
  func.func @ffn_kernel_fused(%arg0: i32, %arg1: memref<16x32xf32, #tpu.memory_space<vmem>>, %arg2: memref<32x64xf32, #tpu.memory_space<vmem>>, %arg3: memref<1x64xf32, #tpu.memory_space<vmem>>, %arg4: memref<64x32xf32, #tpu.memory_space<vmem>>, %arg5: memref<1x32xf32, #tpu.memory_space<vmem>>, %arg6: memref<16x32xf32, #tpu.memory_space<vmem>>) attributes {dimension_semantics = [#tpu.dimension_semantics<parallel>], iteration_bounds = array<i64: 1>, scalar_prefetch = 0 : i64, scratch_operands = 0 : i64, tpu.core_type = #tpu.core_type<tc>, window_params = [{transform_indices = @transform_0, window_bounds = array<i64: 16, 32>}, {pipeline_mode = #tpu.pipeline_mode<synchronous>, transform_indices = @transform_1, window_bounds = array<i64: 32, 64>}, {pipeline_mode = #tpu.pipeline_mode<synchronous>, transform_indices = @transform_2, window_bounds = array<i64: 1, 64>}, {pipeline_mode = #tpu.pipeline_mode<synchronous>, transform_indices = @transform_3, window_bounds = array<i64: 64, 32>}, {pipeline_mode = #tpu.pipeline_mode<synchronous>, transform_indices = @transform_4, window_bounds = array<i64: 1, 32>}, {transform_indices = @transform_5, window_bounds = array<i64: 16, 32>}]} {
    %c0 = arith.constant 0 : index
    %c0_0 = arith.constant 0 : index
    %0 = vector.load %arg1[%c0, %c0_0] : memref<16x32xf32, #tpu.memory_space<vmem>>, vector<16x32xf32>
    %c0_1 = arith.constant 0 : index
    %c0_2 = arith.constant 0 : index
    %1 = vector.load %arg2[%c0_1, %c0_2] : memref<32x64xf32, #tpu.memory_space<vmem>>, vector<32x64xf32>
    %cst = arith.constant dense<0.000000e+00> : vector<16x64xf32>
    %2 = tpu.matmul %0, %1, %cst {dimension_numbers = #tpu.dot_dimension_numbers<[1], [0], [0], [1], [0, 0, 1, 1], [], []>} : vector<16x32xf32>, vector<32x64xf32>, vector<16x64xf32> -> vector<16x64xf32>
    %c0_3 = arith.constant 0 : index
    %c0_4 = arith.constant 0 : index
    %3 = vector.load %arg3[%c0_3, %c0_4] : memref<1x64xf32, #tpu.memory_space<vmem>>, vector<1x64xf32>
    %4 = vector.broadcast %3 : vector<1x64xf32> to vector<16x64xf32>
    %5 = arith.addf %2, %4 : vector<16x64xf32>
    %cst_5 = arith.constant 0.000000e+00 : f32
    %6 = vector.broadcast %cst_5 : f32 to vector<16x64xf32>
    %7 = arith.maximumf %5, %6 : vector<16x64xf32>
    %c0_6 = arith.constant 0 : index
    %c0_7 = arith.constant 0 : index
    %8 = vector.load %arg4[%c0_6, %c0_7] : memref<64x32xf32, #tpu.memory_space<vmem>>, vector<64x32xf32>
    %cst_8 = arith.constant dense<0.000000e+00> : vector<16x32xf32>
    %9 = tpu.matmul %7, %8, %cst_8 {dimension_numbers = #tpu.dot_dimension_numbers<[1], [0], [0], [1], [0, 0, 1, 1], [], []>} : vector<16x64xf32>, vector<64x32xf32>, vector<16x32xf32> -> vector<16x32xf32>
    %c0_9 = arith.constant 0 : index
    %c0_10 = arith.constant 0 : index
    %10 = vector.load %arg5[%c0_9, %c0_10] : memref<1x32xf32, #tpu.memory_space<vmem>>, vector<1x32xf32>
    %11 = vector.broadcast %10 : vector<1x32xf32> to vector<16x32xf32>
    %12 = arith.addf %9, %11 : vector<16x32xf32>
    %c0_11 = arith.constant 0 : index
    %c0_12 = arith.constant 0 : index
    %13 = vector.load %arg6[%c0_11, %c0_12] : memref<16x32xf32, #tpu.memory_space<vmem>>, vector<16x32xf32>
    tpu.vector_store %arg6[%c0_11, %c0_12], %12 {strides = array<i32>} : memref<16x32xf32, #tpu.memory_space<vmem>>, vector<16x32xf32>,
    return
  }
  func.func @transform_0(%arg0: i32) -> (i32, i32) {
    %c0_i32 = arith.constant 0 : i32
    %c0_i32_0 = arith.constant 0 : i32
    return %arg0, %c0_i32 : i32, i32
  }
  func.func @transform_1(%arg0: i32) -> (i32, i32) {
    %c0_i32 = arith.constant 0 : i32
    %c0_i32_0 = arith.constant 0 : i32
    %c0_i32_1 = arith.constant 0 : i32
    return %c0_i32, %c0_i32_0 : i32, i32
  }
  func.func @transform_2(%arg0: i32) -> (i32, i32) {
    %c0_i32 = arith.constant 0 : i32
    %c0_i32_0 = arith.constant 0 : i32
    %c0_i32_1 = arith.constant 0 : i32
    return %c0_i32, %c0_i32_0 : i32, i32
  }
  func.func @transform_3(%arg0: i32) -> (i32, i32) {
    %c0_i32 = arith.constant 0 : i32
    %c0_i32_0 = arith.constant 0 : i32
    %c0_i32_1 = arith.constant 0 : i32
    return %c0_i32, %c0_i32_0 : i32, i32
  }
  func.func @transform_4(%arg0: i32) -> (i32, i32) {
    %c0_i32 = arith.constant 0 : i32
    %c0_i32_0 = arith.constant 0 : i32
    %c0_i32_1 = arith.constant 0 : i32
    return %c0_i32, %c0_i32_0 : i32, i32
  }
  func.func @transform_5(%arg0: i32) -> (i32, i32) {
    %c0_i32 = arith.constant 0 : i32
    %c0_i32_0 = arith.constant 0 : i32
    return %arg0, %c0_i32 : i32, i32
  }
}

</mosaic_0001>

<bundles_post_ra>
// kernel: tpu_custom_call.1
= control target key start
LH: loop header
LB: loop body
LE: loop exit
PB: predicated region body
PF: predicated region fallthrough
CT: control target
= control target key end

     0   :  { %s260_s0 = inlined_call_operand.vmem [shape: f32[16,32], index: 0, kind: input, shape index: {}]   ;;  %s261_s1 = inlined_call_operand.vmem [shape: f32[32,64], index: 1, kind: input, shape index: {}]   ;;  %s262_s2 = inlined_call_operand.vmem [shape: f32[1,64], index: 2, kind: input, shape index: {}]   ;;  %s263_s3 = inlined_call_operand.vmem [shape: f32[64,32], index: 3, kind: input, shape index: {}]   ;;  %s264_s4 = inlined_call_operand.vmem [shape: f32[1,32], index: 4, kind: input, shape index: {}]   ;;  %s265_s5 = inlined_call_operand.hbm [shape: f32[16,32], index: 5, kind: output, shape index: {}]  }
   0x1   :  { %v26_v0 = vld [vmem:[%s261_s1 + $0x18] sm:$0xff]  ;;  %v25_v1 = vld [vmem:[%s261_s1 + $0x10] sm:$0xff]  ;;  %v24_v2 = vld [vmem:[%s261_s1 + $0x8] sm:$0xff] }
   0x2   :  { %129 = vmatpush.msra.mxu3 %v26_v0  ;;  %50 = vmatpush.msra.mxu0 %v26_v0  ;;  %v70_v3 = vld [vmem:[%s263_s3 + $0x38] sm:$0xff]  ;;  %v69_v4 = vld [vmem:[%s263_s3 + $0x30] sm:$0xff]  ;;  %v23_v5 = vld [vmem:[%s261_s1] sm:$0xff] }
   0x3   :  { %133 = vmatpush.msra.mxu2 %v70_v3  ;;  %90 = vmatpush.msra.mxu1 %v70_v3 }
   0x4   :  { %130 = vmatpush.msra.mxu3 %v25_v1  ;;  %51 = vmatpush.msra.mxu0 %v25_v1 }
   0x5   :  { %10 = vsyncpa [#allocation3], 0  ;;  %v22_v6 = vld [vmem:[%s260_s0 + $0x8] sm:$0xff]  ;;  %vm31_vm0 = vcmask 261120   ;;  %v21_v7 = vld [vmem:[%s260_s0] sm:$0xff]  ;;  %134 = vmatpush.msra.mxu2 %v69_v4  ;;  %91 = vmatpush.msra.mxu1 %v69_v4  ;;  %vm75_vm1 = vcmask 523264  }
   0x6   :  { %131 = vmatpush.msra.mxu3 %v24_v2  ;;  %52 = vmatpush.msra.mxu0 %v24_v2  ;;  %v68_v8 = vld [vmem:[%s263_s3 + $0x28] sm:$0xff]  ;;  %v67_v9 = vld [vmem:[%s263_s3 + $0x20] sm:$0xff]  ;;  %v66_v10 = vld [vmem:[%s263_s3 + $0x18] sm:$0xff]  ;;  %s113_s25 = sshll.u32 %s265_s5, 4  ;;  %s173_s26 = smov 128   ;;  %s114_s25 = int_to_ptr.hbm [resolvable:$true] %s113_s25 }
   0x7   :  { %135 = vmatpush.msra.mxu2 %v68_v8  ;;  %92 = vmatpush.msra.mxu1 %v68_v8  ;;  %v65_v11 = vld [vmem:[%s263_s3 + $0x10] sm:$0xff]  ;;  %v64_v12 = vld [vmem:[%s263_s3 + $0x8] sm:$0xff]  ;;  %v63_v13 = vld [vmem:[%s263_s3] sm:$0xff]  ;;  %s172_s3 = smov [#allocation2]   ;;  %s174_s27 = smov 8  }
   0x8   :  { %132 = vmatpush.msra.mxu3 %v23_v5  ;;  %53 = vmatpush.msra.mxu0 %v23_v5  ;;  %v144_v14 = vld [vmem:[%s262_s2] ss:$0 sm:$0xff]  ;;  %s111_s23 = sshll.u32 %s172_s3, 4  ;;  %s112_s23 = int_to_ptr.vmem [resolvable:$true] %s111_s23 }
   0x9   :  { %126 = vmatmul.msk.f32.vlgmr.msra.gmra.mxu3 %vm31_vm0, %v22_v6  ;;  %125 = vmatmul.msk.f32.vlgmr.msra.gmra.mxu0 %vm31_vm0, %v21_v7  ;;  %v145_v21 = vld [vmem:[%s264_s4] ss:$0 sm:$0xff] }
   0xa   :  { %136 = vmatpush.msra.mxu2 %v67_v9  ;;  %93 = vmatpush.msra.mxu1 %v67_v9 }
   0xc   :  { %137 = vmatpush.msra.mxu2 %v66_v10  ;;  %94 = vmatpush.msra.mxu1 %v66_v10 }
   0xe   :  { %138 = vmatpush.msra.mxu2 %v65_v11  ;;  %95 = vmatpush.msra.mxu1 %v65_v11 }
  0x10   :  { %139 = vmatpush.msra.mxu2 %v64_v12  ;;  %96 = vmatpush.msra.mxu1 %v64_v12 }
  0x12   :  { %140 = vmatpush.msra.mxu2 %v63_v13  ;;  %97 = vmatpush.msra.mxu1 %v63_v13 }
  0x86   :  { %v55_v15 = vpop.f32.mrf.mxu0 }
  0x87   :  { %v56_v16 = vadd.f32 %v144_v14, %v55_v15 }
  0x89   :  { %v61_v17 = vmax.f32 %v56_v16, 0.0 }
  0x8b   :  { %127 = vmatmul.msk.f32.vlgmr.msra.gmra.mxu1 %vm75_vm1, %v61_v17 }
  0x8c   :  { %v58_v18 = vpop.f32.mrf.mxu3 }
  0x8d   :  { %v59_v19 = vadd.f32 %v144_v14, %v58_v18 }
  0x8f   :  { %v62_v20 = vmax.f32 %v59_v19, 0.0 }
  0x91   :  { %128 = vmatmul.msk.f32.vlgmr.msra.gmra.mxu2 %vm75_vm1, %v62_v20 }
 0x108   :  { %v99_v22 = vpop.f32.mrf.mxu1 }
 0x109   :  { %v100_v23 = vadd.f32 %v145_v21, %v99_v22 }
 0x10b   :  { %105 = vst.msk [vmem:[#allocation2] sm:$0xff] %vm31_vm0, %v100_v23 }
 0x114   :  { %v102_v24 = vpop.f32.mrf.mxu2 }
 0x115   :  { %v103_v25 = vadd.f32 %v145_v21, %v102_v24 }
 0x117   :  { %106 = vst.msk [vmem:[#allocation2 + $0x8] sm:$0xff] %vm31_vm0, %v103_v25 }
 0x118   :  { %119 = dma.vmem_to_hbm [thread:$0]  %s112_s23, 256, %s114_s25, [#allocation3], %s173_s26, %s173_s26, %s174_s27  }
 0x119   :  { %170 = dma.done.wait [#allocation3], 256  }
 0x11a   :  { %171 = vsyncadd [#allocation3], 4294967040 }
 0x11b   :  { %124 = vsyncpa [#allocation3], 1 }

</bundles_post_ra>
